<compile_context>
chip_gen: v5e
topology: v5e:2x2
jax: 0.10.0
libtpu: 0.0.40
codegen_flags: <defaults>
</compile_context>

<pallas_src>
import functools
import math

import numpy as np
import jax
import jax.numpy as jnp
from jax.experimental import pallas as pl
from jax.experimental.pallas import tpu as pltpu

EPS = 1e-8
_LANE = 128
_SUBLANE = 8


def _round_up(x, m):
    return (x + m - 1) // m * m


def _sigmoid(x):
    # tanh form: goes to the EUP, avoids an explicit fp32 divide on the VPU.
    return 0.5 * jnp.tanh(0.5 * x) + 0.5


def _silu(x):
    return x * _sigmoid(x)


def _softplus(x):
    # numerically stable log(1 + exp(x)), matches torch.nn.Softplus defaults
    return jnp.maximum(x, 0.0) + jnp.log(1.0 + jnp.exp(-jnp.abs(x)))


def _padded_layer_dims(input_dim, hidden_dim, latent_dim):
    """(fan_in, fan_out, fan_in_pad, fan_out_pad) per layer; all pads 128-aligned."""
    ip = _round_up(input_dim, _LANE)
    lp = _round_up(latent_dim, _LANE)
    h1 = _round_up(hidden_dim, _LANE)
    h2 = _round_up(hidden_dim // 2, _LANE)
    h3 = _round_up(hidden_dim // 4, _LANE)
    h4 = _round_up(hidden_dim // 8, _LANE)
    enc = [(input_dim, hidden_dim, ip, h1),
           (hidden_dim, hidden_dim // 2, h1, h2),
           (hidden_dim // 2, hidden_dim // 4, h2, h3),
           (hidden_dim // 4, hidden_dim // 8, h3, h4)]
    head = (hidden_dim // 8, latent_dim, h4, lp)   # fused mu|logvar head
    dec = [(latent_dim, hidden_dim // 8, lp, h4),
           (hidden_dim // 8, hidden_dim // 4, h4, h3),
           (hidden_dim // 4, hidden_dim // 2, h3, h2),
           (hidden_dim // 2, hidden_dim, h2, h1),
           (hidden_dim, input_dim, h1, ip)]
    return enc, head, dec, ip, lp


# --------------------------------------------------------------------------- #
# Kernel
# --------------------------------------------------------------------------- #
def vae_kernel(x_ref, eps_ref, *refs,
               n_enc, n_dec, lat_pad, lat_dim, enc_out, dec_out):
    """refs = [W_0 .. W_{n_w-1}, bias_table, stats_out, xrec_out]."""
    n_w = n_enc + 1 + n_dec
    w_refs = refs[:n_w]
    b_ref = refs[n_w]
    stats_ref = refs[n_w + 1]
    xrec_ref = refs[n_w + 2]

    biases = b_ref[...]  # (n_w, BW) fp32, row i = zero-padded bias of layer i

    def dense(h, idx, out_pad):
        w = w_refs[idx][...]                               # bf16 (fi_pad, fo_pad)
        y = jnp.dot(h.astype(jnp.bfloat16), w,
                    preferred_element_type=jnp.float32)    # fp32 MXU accumulation
        # out_pad is a multiple of 128 -> full-lane (unmasked) bias add.
        return y + biases[idx:idx + 1, :out_pad]

    # ---- encoder trunk (padded columns stay exactly zero through SiLU) ----
    h = x_ref[...]                                          # bf16 (TB, in_pad)
    for li in range(n_enc):
        h = _silu(dense(h, li, enc_out[li]))

    # ---- fused mu / log_var head: one MXU pass, lane-aligned split ----
    head = dense(h, n_enc, 2 * lat_pad)
    mu = head[:, :lat_pad]
    log_var = head[:, lat_pad:]

    # padded latent columns: force std=1 (mu is already 0) so the KL term is 0
    lane = jax.lax.broadcasted_iota(jnp.int32, mu.shape, 1)
    valid = lane < lat_dim
    std = jnp.where(valid, _softplus(log_var) + EPS, 1.0)

    # ---- reparameterize: z = mu + std * eps (rsample of the diag-MVN) ----
    z = mu + std * eps_ref[...]

    # ---- decoder ----
    d = z
    for li in range(n_dec):
        d = dense(d, n_enc + 1 + li, dec_out[li])
        d = _silu(d) if li < n_dec - 1 else _sigmoid(d)
    xrec_ref[...] = d.astype(xrec_ref.dtype)                # bf16, full-lane store

    # ---- per-sample KL( N(mu, diag(std^2)) || N(0, I) ) ----
    kl = 0.5 * jnp.sum(std * std + mu * mu - 1.0 - 2.0 * jnp.log(std),
                       axis=-1, keepdims=True)

    # ---- four 128-lane-aligned unmasked slab stores (no concatenate) ----
    stats_ref[:, :lat_pad] = mu
    stats_ref[:, lat_pad:2 * lat_pad] = std
    stats_ref[:, 2 * lat_pad:3 * lat_pad] = z
    stats_ref[:, 3 * lat_pad:] = jnp.broadcast_to(kl, mu.shape)


# --------------------------------------------------------------------------- #
# Params / tiling helpers
# --------------------------------------------------------------------------- #
def init_params(key, input_dim, hidden_dim, latent_dim):
    """PyTorch-Linear-like init; weights zero-padded to 128-lane multiples (bf16),
    biases packed into one zero-padded fp32 table (one row per layer)."""
    enc, head, dec, _, lat_pad = _padded_layer_dims(input_dim, hidden_dim, latent_dim)

    def linear(k, fi, fo):
        kw, kb = jax.random.split(k)
        bound = 1.0 / math.sqrt(float(fi))
        w = jax.random.uniform(kw, (fi, fo), jnp.float32, -bound, bound)
        b = jax.random.uniform(kb, (fo,), jnp.float32, -bound, bound)
        return w, b

    out_widths = [fo_p for (_, _, _, fo_p) in enc] + [2 * lat_pad] + \
                 [fo_p for (_, _, _, fo_p) in dec]
    bw = max(out_widths)

    keys = jax.random.split(key, len(enc) + 2 + len(dec))
    ki = 0
    weights, bias_rows = [], []

    for (fi, fo, fi_p, fo_p) in enc:
        w, b = linear(keys[ki], fi, fo); ki += 1
        wp = jnp.zeros((fi_p, fo_p), jnp.float32).at[:fi, :fo].set(w)
        bp = jnp.zeros((bw,), jnp.float32).at[:fo].set(b)
        weights.append(wp.astype(jnp.bfloat16)); bias_rows.append(bp)

    # fused mu/logvar head: cols [0, lat_pad) = mu head, [lat_pad, 2*lat_pad) = logvar head
    fi, fo, fi_p, _ = head
    w_mu, b_mu = linear(keys[ki], fi, fo); ki += 1
    w_lv, b_lv = linear(keys[ki], fi, fo); ki += 1
    wp = jnp.zeros((fi_p, 2 * lat_pad), jnp.float32)
    wp = wp.at[:fi, :fo].set(w_mu).at[:fi, lat_pad:lat_pad + fo].set(w_lv)
    bp = jnp.zeros((bw,), jnp.float32).at[:fo].set(b_mu).at[lat_pad:lat_pad + fo].set(b_lv)
    weights.append(wp.astype(jnp.bfloat16)); bias_rows.append(bp)

    for (fi, fo, fi_p, fo_p) in dec:
        w, b = linear(keys[ki], fi, fo); ki += 1
        wp = jnp.zeros((fi_p, fo_p), jnp.float32).at[:fi, :fo].set(w)
        bp = jnp.zeros((bw,), jnp.float32).at[:fo].set(b)
        weights.append(wp.astype(jnp.bfloat16)); bias_rows.append(bp)

    return tuple(weights), jnp.stack(bias_rows, axis=0)


def _vmem_budget():
    """Generation-aware VMEM budget (v7x: 64 MiB/TC, v5e/v6e: 128 MiB)."""
    try:
        cap = int(pltpu.get_tpu_info().vmem_capacity_bytes)
    except Exception:
        cap = 64 * 1024 * 1024  # conservative fallback
    budget = max(16 * 1024 * 1024, min(int(0.70 * cap), cap - 16 * 1024 * 1024))
    return budget, cap


def _vmem_estimate(tb, in_pad, lat_pad, stats_w, wdims, n_rows, bw):
    w_bytes = sum(fi * fo * 2 for fi, fo in wdims)               # bf16 weights
    b_bytes = _round_up(n_rows, _SUBLANE) * bw * 4               # fp32 bias table
    io = tb * (2 * 2 * in_pad        # x in + x_rec out (bf16)
               + 4 * lat_pad         # eps (fp32)
               + 4 * stats_w)        # packed stats (fp32)
    act = 6 * tb * max(in_pad, bw) * 4                           # live fp32 activations
    return 2 * (w_bytes + b_bytes + io) + act                    # x2: double-buffered


def _choose_batch_tile(batch, est_fn, budget, cap_tb=1024):
    # biggest tile (<= cap_tb) whose honest footprint fits the VMEM budget
    tb = min(cap_tb, _round_up(batch, _SUBLANE))
    while tb > _SUBLANE and est_fn(tb) > budget:
        tb = max(_SUBLANE, _round_up(tb // 2, _SUBLANE))
    # megacore (v7x): prefer >= 2 grid steps so both TensorCores get work
    if _round_up(batch, tb) // tb < 2 and tb > _SUBLANE:
        tb = max(_SUBLANE, _round_up(tb // 2, _SUBLANE))
    return tb


# --------------------------------------------------------------------------- #
# Forward wrapper
# --------------------------------------------------------------------------- #
@functools.partial(jax.jit,
                   static_argnames=("input_dim", "hidden_dim", "latent_dim"))
def vae_forward(x, noise, weights, bias_table, *,
                input_dim, hidden_dim, latent_dim):
    enc, head, dec, in_pad, lat_pad = _padded_layer_dims(
        input_dim, hidden_dim, latent_dim)
    n_enc, n_dec = len(enc), len(dec)
    n_w = n_enc + 1 + n_dec
    bw = bias_table.shape[1]

    batch = x.shape[0]
    stats_w = 4 * lat_pad                      # [ mu | std | z | kl(broadcast) ]

    wdims = [(w.shape[0], w.shape[1]) for w in weights]
    budget, vmem_cap = _vmem_budget()
    est_fn = functools.partial(_vmem_estimate, in_pad=in_pad, lat_pad=lat_pad,
                               stats_w=stats_w, wdims=wdims, n_rows=n_w, bw=bw)
    tb = _choose_batch_tile(batch, est_fn, budget)
    b_pad = _round_up(batch, tb)
    grid = (b_pad // tb,)

    # bf16 + lane-padded I/O streams (zero-padded rows/cols)
    x_p = jnp.pad(x.astype(jnp.bfloat16),
                  ((0, b_pad - batch), (0, in_pad - input_dim)))
    eps_p = jnp.pad(noise.astype(jnp.float32),
                    ((0, b_pad - batch), (0, lat_pad - latent_dim)))

    const2d = lambda i: (0, 0)                 # weights/biases: VMEM-resident
    row_spec = lambda width: pl.BlockSpec((tb, width), lambda i: (i, 0))

    in_specs = ([row_spec(in_pad), row_spec(lat_pad)]
                + [pl.BlockSpec(w.shape, const2d) for w in weights]
                + [pl.BlockSpec(bias_table.shape, const2d)])
    out_specs = (row_spec(stats_w), row_spec(in_pad))
    out_shape = (jax.ShapeDtypeStruct((b_pad, stats_w), jnp.float32),
                 jax.ShapeDtypeStruct((b_pad, in_pad), jnp.bfloat16))

    enc_out = tuple(fo_p for (_, _, _, fo_p) in enc)
    dec_out = tuple(fo_p for (_, _, _, fo_p) in dec)

    flops = int(2 * b_pad * sum(fi * fo for fi, fo in wdims))
    transcendentals = int(b_pad * (sum(enc_out) + sum(dec_out) + 4 * lat_pad))
    bytes_accessed = int(
        b_pad * (2 * 2 * in_pad + 4 * lat_pad + 4 * stats_w)
        + sum(fi * fo for fi, fo in wdims) * 2
        + _round_up(n_w, _SUBLANE) * bw * 4)

    vmem_limit = int(min(vmem_cap, max(budget, 2 * est_fn(tb))))

    kernel = functools.partial(
        vae_kernel, n_enc=n_enc, n_dec=n_dec, lat_pad=lat_pad,
        lat_dim=latent_dim, enc_out=enc_out, dec_out=dec_out)

    stats, x_rec = pl.pallas_call(
        kernel,
        grid=grid,
        in_specs=in_specs,
        out_specs=out_specs,
        out_shape=out_shape,
        compiler_params=pltpu.CompilerParams(
            dimension_semantics=("parallel",),
            vmem_limit_bytes=vmem_limit),
        cost_estimate=pl.CostEstimate(flops=flops,
                                      transcendentals=transcendentals,
                                      bytes_accessed=bytes_accessed),
    )(x_p, eps_p, *weights, bias_table)

    L = latent_dim
    mu = stats[:batch, :L]
    std = stats[:batch, lat_pad:lat_pad + L]
    z = stats[:batch, 2 * lat_pad:2 * lat_pad + L]
    kl = stats[:batch, 3 * lat_pad]
    x_reconstructed = x_rec[:batch, :input_dim].astype(jnp.float32)
    return {
        "mu": mu,
        "std": std,
        "sample": z,
        "x_reconstructed": x_reconstructed,
        "kl": kl,
        "loss_kl": jnp.mean(kl),
    }


# --------------------------------------------------------------------------- #
# Pure-JAX reference (mirrors the kernel math, incl. bf16 matmuls / bf16 x)
# --------------------------------------------------------------------------- #
def vae_reference(x, noise, weights, bias_table, *,
                  input_dim, hidden_dim, latent_dim):
    enc, head, dec, _, lat_pad = _padded_layer_dims(input_dim, hidden_dim, latent_dim)
    n_enc, n_dec = len(enc), len(dec)

    def dense(h, idx, fi, fo, col0=0):
        w = weights[idx][:fi, col0:col0 + fo]
        b = bias_table[idx, col0:col0 + fo]
        y = jnp.dot(h.astype(jnp.bfloat16), w, preferred_element_type=jnp.float32)
        return y + b[None, :]

    h = x.astype(jnp.bfloat16)
    for li, (fi, fo, _, _) in enumerate(enc):
        h = _silu(dense(h, li, fi, fo))
    fi_h, fo_h, _, _ = head
    mu = dense(h, n_enc, fi_h, latent_dim, 0)
    log_var = dense(h, n_enc, fi_h, latent_dim, lat_pad)
    std = _softplus(log_var) + EPS
    z = mu + std * noise
    d = z
    for li, (fi, fo, _, _) in enumerate(dec):
        d = dense(d, n_enc + 1 + li, fi, fo)
        d = _silu(d) if li < n_dec - 1 else _sigmoid(d)
    kl = 0.5 * jnp.sum(std * std + mu * mu - 1.0 - 2.0 * jnp.log(std), axis=-1)
    return mu, std, z, d, kl


if __name__ == "__main__":
    input_dim, hidden_dim, latent_dim = 64, 32, 4
    batch = 8

    key = jax.random.PRNGKey(0)
    k_param, k_x, k_eps = jax.random.split(key, 3)

    weights, bias_table = init_params(k_param, input_dim, hidden_dim, latent_dim)
    x = jax.random.uniform(k_x, (batch, input_dim), jnp.float32)   # "image" in [0,1]
    noise = jax.random.normal(k_eps, (batch, latent_dim), jnp.float32)

    out = vae_forward(x, noise, weights, bias_table,
                      input_dim=input_dim, hidden_dim=hidden_dim,
                      latent_dim=latent_dim)
    out = jax.block_until_ready(out)

    mu_r, std_r, z_r, xrec_r, kl_r = vae_reference(
        x, noise, weights, bias_table, input_dim=input_dim,
        hidden_dim=hidden_dim, latent_dim=latent_dim)

    assert out["x_reconstructed"].shape == (batch, input_dim)
    assert out["sample"].shape == (batch, latent_dim)
    assert bool(jnp.all(jnp.isfinite(out["x_reconstructed"])))
    assert bool(jnp.isfinite(out["loss_kl"]))
    np.testing.assert_allclose(np.asarray(out["mu"]), np.asarray(mu_r),
                               rtol=2e-2, atol=2e-2)
    np.testing.assert_allclose(np.asarray(out["std"]), np.asarray(std_r),
                               rtol=2e-2, atol=2e-2)
    np.testing.assert_allclose(np.asarray(out["sample"]), np.asarray(z_r),
                               rtol=2e-2, atol=2e-2)
    np.testing.assert_allclose(np.asarray(out["x_reconstructed"]),
                               np.asarray(xrec_r), rtol=2e-2, atol=2e-2)
    np.testing.assert_allclose(np.asarray(out["kl"]), np.asarray(kl_r),
                               rtol=2e-2, atol=2e-2)
    np.testing.assert_allclose(float(out["loss_kl"]), float(jnp.mean(kl_r)),
                               rtol=2e-2, atol=2e-2)
    print("KERNEL_OK")
</pallas_src>

<mosaic_0001>
module attributes {stable_mosaic.version = 11 : i64} {
  func.func @vae_kernel(%arg0: i32, %arg1: memref<8x128xbf16, #tpu.memory_space<vmem>>, %arg2: memref<8x128xf32, #tpu.memory_space<vmem>>, %arg3: memref<128x128xbf16, #tpu.memory_space<vmem>>, %arg4: memref<128x128xbf16, #tpu.memory_space<vmem>>, %arg5: memref<128x128xbf16, #tpu.memory_space<vmem>>, %arg6: memref<128x128xbf16, #tpu.memory_space<vmem>>, %arg7: memref<128x256xbf16, #tpu.memory_space<vmem>>, %arg8: memref<128x128xbf16, #tpu.memory_space<vmem>>, %arg9: memref<128x128xbf16, #tpu.memory_space<vmem>>, %arg10: memref<128x128xbf16, #tpu.memory_space<vmem>>, %arg11: memref<128x128xbf16, #tpu.memory_space<vmem>>, %arg12: memref<128x128xbf16, #tpu.memory_space<vmem>>, %arg13: memref<10x256xf32, #tpu.memory_space<vmem>>, %arg14: memref<8x512xf32, #tpu.memory_space<vmem>>, %arg15: memref<8x128xbf16, #tpu.memory_space<vmem>>) attributes {dimension_semantics = [#tpu.dimension_semantics<parallel>], iteration_bounds = array<i64: 1>, scalar_prefetch = 0 : i64, scratch_operands = 0 : i64, tpu.core_type = #tpu.core_type<tc>, window_params = [{transform_indices = @transform_0, window_bounds = array<i64: 8, 128>}, {transform_indices = @transform_1, window_bounds = array<i64: 8, 128>}, {pipeline_mode = #tpu.pipeline_mode<synchronous>, transform_indices = @transform_2, window_bounds = array<i64: 128, 128>}, {pipeline_mode = #tpu.pipeline_mode<synchronous>, transform_indices = @transform_3, window_bounds = array<i64: 128, 128>}, {pipeline_mode = #tpu.pipeline_mode<synchronous>, transform_indices = @transform_4, window_bounds = array<i64: 128, 128>}, {pipeline_mode = #tpu.pipeline_mode<synchronous>, transform_indices = @transform_5, window_bounds = array<i64: 128, 128>}, {pipeline_mode = #tpu.pipeline_mode<synchronous>, transform_indices = @transform_6, window_bounds = array<i64: 128, 256>}, {pipeline_mode = #tpu.pipeline_mode<synchronous>, transform_indices = @transform_7, window_bounds = array<i64: 128, 128>}, {pipeline_mode = #tpu.pipeline_mode<synchronous>, transform_indices = @transform_8, window_bounds = array<i64: 128, 128>}, {pipeline_mode = #tpu.pipeline_mode<synchronous>, transform_indices = @transform_9, window_bounds = array<i64: 128, 128>}, {pipeline_mode = #tpu.pipeline_mode<synchronous>, transform_indices = @transform_10, window_bounds = array<i64: 128, 128>}, {pipeline_mode = #tpu.pipeline_mode<synchronous>, transform_indices = @transform_11, window_bounds = array<i64: 128, 128>}, {pipeline_mode = #tpu.pipeline_mode<synchronous>, transform_indices = @transform_12, window_bounds = array<i64: 10, 256>}, {transform_indices = @transform_13, window_bounds = array<i64: 8, 512>}, {transform_indices = @transform_14, window_bounds = array<i64: 8, 128>}]} {
    %c0 = arith.constant 0 : index
    %c0_0 = arith.constant 0 : index
    %0 = vector.load %arg13[%c0, %c0_0] : memref<10x256xf32, #tpu.memory_space<vmem>>, vector<10x256xf32>
    %c0_1 = arith.constant 0 : index
    %c0_2 = arith.constant 0 : index
    %1 = vector.load %arg1[%c0_1, %c0_2] : memref<8x128xbf16, #tpu.memory_space<vmem>>, vector<8x128xbf16>
    %c0_3 = arith.constant 0 : index
    %c0_4 = arith.constant 0 : index
    %2 = vector.load %arg3[%c0_3, %c0_4] : memref<128x128xbf16, #tpu.memory_space<vmem>>, vector<128x128xbf16>
    %cst = arith.constant dense<0.000000e+00> : vector<8x128xf32>
    %3 = tpu.matmul %1, %2, %cst {dimension_numbers = #tpu.dot_dimension_numbers<[1], [0], [0], [1], [0, 0, 1, 1], [], []>} : vector<8x128xbf16>, vector<128x128xbf16>, vector<8x128xf32> -> vector<8x128xf32>
    %4 = vector.extract_strided_slice %0 {offsets = [0, 0], sizes = [1, 128], strides = [1, 1]} : vector<10x256xf32> to vector<1x128xf32>
    %5 = vector.broadcast %4 : vector<1x128xf32> to vector<8x128xf32>
    %6 = arith.addf %3, %5 : vector<8x128xf32>
    %cst_5 = arith.constant 5.000000e-01 : f32
    %7 = vector.broadcast %cst_5 : f32 to vector<8x128xf32>
    %8 = arith.mulf %7, %6 : vector<8x128xf32>
    %9 = math.tanh %8 : vector<8x128xf32>
    %cst_6 = arith.constant 5.000000e-01 : f32
    %10 = vector.broadcast %cst_6 : f32 to vector<8x128xf32>
    %11 = arith.mulf %10, %9 : vector<8x128xf32>
    %cst_7 = arith.constant 5.000000e-01 : f32
    %12 = vector.broadcast %cst_7 : f32 to vector<8x128xf32>
    %13 = arith.addf %11, %12 : vector<8x128xf32>
    %14 = arith.mulf %6, %13 : vector<8x128xf32>
    %c0_8 = arith.constant 0 : index
    %c0_9 = arith.constant 0 : index
    %15 = vector.load %arg4[%c0_8, %c0_9] : memref<128x128xbf16, #tpu.memory_space<vmem>>, vector<128x128xbf16>
    %16 = arith.truncf %14 : vector<8x128xf32> to vector<8x128xbf16>
    %cst_10 = arith.constant dense<0.000000e+00> : vector<8x128xf32>
    %17 = tpu.matmul %16, %15, %cst_10 {dimension_numbers = #tpu.dot_dimension_numbers<[1], [0], [0], [1], [0, 0, 1, 1], [], []>} : vector<8x128xbf16>, vector<128x128xbf16>, vector<8x128xf32> -> vector<8x128xf32>
    %18 = vector.extract_strided_slice %0 {offsets = [1, 0], sizes = [1, 128], strides = [1, 1]} : vector<10x256xf32> to vector<1x128xf32>
    %19 = vector.broadcast %18 : vector<1x128xf32> to vector<8x128xf32>
    %20 = arith.addf %17, %19 : vector<8x128xf32>
    %cst_11 = arith.constant 5.000000e-01 : f32
    %21 = vector.broadcast %cst_11 : f32 to vector<8x128xf32>
    %22 = arith.mulf %21, %20 : vector<8x128xf32>
    %23 = math.tanh %22 : vector<8x128xf32>
    %cst_12 = arith.constant 5.000000e-01 : f32
    %24 = vector.broadcast %cst_12 : f32 to vector<8x128xf32>
    %25 = arith.mulf %24, %23 : vector<8x128xf32>
    %cst_13 = arith.constant 5.000000e-01 : f32
    %26 = vector.broadcast %cst_13 : f32 to vector<8x128xf32>
    %27 = arith.addf %25, %26 : vector<8x128xf32>
    %28 = arith.mulf %20, %27 : vector<8x128xf32>
    %c0_14 = arith.constant 0 : index
    %c0_15 = arith.constant 0 : index
    %29 = vector.load %arg5[%c0_14, %c0_15] : memref<128x128xbf16, #tpu.memory_space<vmem>>, vector<128x128xbf16>
    %30 = arith.truncf %28 : vector<8x128xf32> to vector<8x128xbf16>
    %cst_16 = arith.constant dense<0.000000e+00> : vector<8x128xf32>
    %31 = tpu.matmul %30, %29, %cst_16 {dimension_numbers = #tpu.dot_dimension_numbers<[1], [0], [0], [1], [0, 0, 1, 1], [], []>} : vector<8x128xbf16>, vector<128x128xbf16>, vector<8x128xf32> -> vector<8x128xf32>
    %32 = vector.extract_strided_slice %0 {offsets = [2, 0], sizes = [1, 128], strides = [1, 1]} : vector<10x256xf32> to vector<1x128xf32>
    %33 = vector.broadcast %32 : vector<1x128xf32> to vector<8x128xf32>
    %34 = arith.addf %31, %33 : vector<8x128xf32>
    %cst_17 = arith.constant 5.000000e-01 : f32
    %35 = vector.broadcast %cst_17 : f32 to vector<8x128xf32>
    %36 = arith.mulf %35, %34 : vector<8x128xf32>
    %37 = math.tanh %36 : vector<8x128xf32>
    %cst_18 = arith.constant 5.000000e-01 : f32
    %38 = vector.broadcast %cst_18 : f32 to vector<8x128xf32>
    %39 = arith.mulf %38, %37 : vector<8x128xf32>
    %cst_19 = arith.constant 5.000000e-01 : f32
    %40 = vector.broadcast %cst_19 : f32 to vector<8x128xf32>
    %41 = arith.addf %39, %40 : vector<8x128xf32>
    %42 = arith.mulf %34, %41 : vector<8x128xf32>
    %c0_20 = arith.constant 0 : index
    %c0_21 = arith.constant 0 : index
    %43 = vector.load %arg6[%c0_20, %c0_21] : memref<128x128xbf16, #tpu.memory_space<vmem>>, vector<128x128xbf16>
    %44 = arith.truncf %42 : vector<8x128xf32> to vector<8x128xbf16>
    %cst_22 = arith.constant dense<0.000000e+00> : vector<8x128xf32>
    %45 = tpu.matmul %44, %43, %cst_22 {dimension_numbers = #tpu.dot_dimension_numbers<[1], [0], [0], [1], [0, 0, 1, 1], [], []>} : vector<8x128xbf16>, vector<128x128xbf16>, vector<8x128xf32> -> vector<8x128xf32>
    %46 = vector.extract_strided_slice %0 {offsets = [3, 0], sizes = [1, 128], strides = [1, 1]} : vector<10x256xf32> to vector<1x128xf32>
    %47 = vector.broadcast %46 : vector<1x128xf32> to vector<8x128xf32>
    %48 = arith.addf %45, %47 : vector<8x128xf32>
    %cst_23 = arith.constant 5.000000e-01 : f32
    %49 = vector.broadcast %cst_23 : f32 to vector<8x128xf32>
    %50 = arith.mulf %49, %48 : vector<8x128xf32>
    %51 = math.tanh %50 : vector<8x128xf32>
    %cst_24 = arith.constant 5.000000e-01 : f32
    %52 = vector.broadcast %cst_24 : f32 to vector<8x128xf32>
    %53 = arith.mulf %52, %51 : vector<8x128xf32>
    %cst_25 = arith.constant 5.000000e-01 : f32
    %54 = vector.broadcast %cst_25 : f32 to vector<8x128xf32>
    %55 = arith.addf %53, %54 : vector<8x128xf32>
    %56 = arith.mulf %48, %55 : vector<8x128xf32>
    %c0_26 = arith.constant 0 : index
    %c0_27 = arith.constant 0 : index
    %57 = vector.load %arg7[%c0_26, %c0_27] : memref<128x256xbf16, #tpu.memory_space<vmem>>, vector<128x256xbf16>
    %58 = arith.truncf %56 : vector<8x128xf32> to vector<8x128xbf16>
    %cst_28 = arith.constant dense<0.000000e+00> : vector<8x256xf32>
    %59 = tpu.matmul %58, %57, %cst_28 {dimension_numbers = #tpu.dot_dimension_numbers<[1], [0], [0], [1], [0, 0, 1, 1], [], []>} : vector<8x128xbf16>, vector<128x256xbf16>, vector<8x256xf32> -> vector<8x256xf32>
    %60 = vector.extract_strided_slice %0 {offsets = [4, 0], sizes = [1, 256], strides = [1, 1]} : vector<10x256xf32> to vector<1x256xf32>
    %61 = vector.broadcast %60 : vector<1x256xf32> to vector<8x256xf32>
    %62 = arith.addf %59, %61 : vector<8x256xf32>
    %63 = vector.extract_strided_slice %62 {offsets = [0, 0], sizes = [8, 128], strides = [1, 1]} : vector<8x256xf32> to vector<8x128xf32>
    %64 = vector.extract_strided_slice %62 {offsets = [0, 128], sizes = [8, 128], strides = [1, 1]} : vector<8x256xf32> to vector<8x128xf32>
    %65 = tpu.iota {dimensions = array<i32: 1>} : vector<8x128xi32>
    %c4_i32 = arith.constant 4 : i32
    %66 = vector.broadcast %c4_i32 : i32 to vector<8x128xi32>
    %67 = arith.cmpi slt, %65, %66 : vector<8x128xi32>
    %cst_29 = arith.constant 0.000000e+00 : f32
    %68 = vector.broadcast %cst_29 : f32 to vector<8x128xf32>
    %69 = arith.maximumf %64, %68 : vector<8x128xf32>
    %70 = math.absf %64 : vector<8x128xf32>
    %cst_30 = arith.constant 0.000000e+00 : f32
    %71 = vector.broadcast %cst_30 : f32 to vector<8x128xf32>
    %72 = arith.subf %71, %70 : vector<8x128xf32>
    %73 = math.exp %72 : vector<8x128xf32>
    %cst_31 = arith.constant 1.000000e+00 : f32
    %74 = vector.broadcast %cst_31 : f32 to vector<8x128xf32>
    %75 = arith.addf %74, %73 : vector<8x128xf32>
    %76 = math.log %75 : vector<8x128xf32>
    %77 = arith.addf %69, %76 : vector<8x128xf32>
    %cst_32 = arith.constant 9.99999993E-9 : f32
    %78 = vector.broadcast %cst_32 : f32 to vector<8x128xf32>
    %79 = arith.addf %77, %78 : vector<8x128xf32>
    %cst_33 = arith.constant 1.000000e+00 : f32
    %80 = vector.broadcast %cst_33 : f32 to vector<8x128xf32>
    %81 = arith.select %67, %79, %80 : vector<8x128xi1>, vector<8x128xf32>
    %c0_34 = arith.constant 0 : index
    %c0_35 = arith.constant 0 : index
    %82 = vector.load %arg2[%c0_34, %c0_35] : memref<8x128xf32, #tpu.memory_space<vmem>>, vector<8x128xf32>
    %83 = arith.mulf %81, %82 : vector<8x128xf32>
    %84 = arith.addf %63, %83 : vector<8x128xf32>
    %c0_36 = arith.constant 0 : index
    %c0_37 = arith.constant 0 : index
    %85 = vector.load %arg8[%c0_36, %c0_37] : memref<128x128xbf16, #tpu.memory_space<vmem>>, vector<128x128xbf16>
    %86 = arith.truncf %84 : vector<8x128xf32> to vector<8x128xbf16>
    %cst_38 = arith.constant dense<0.000000e+00> : vector<8x128xf32>
    %87 = tpu.matmul %86, %85, %cst_38 {dimension_numbers = #tpu.dot_dimension_numbers<[1], [0], [0], [1], [0, 0, 1, 1], [], []>} : vector<8x128xbf16>, vector<128x128xbf16>, vector<8x128xf32> -> vector<8x128xf32>
    %88 = vector.extract_strided_slice %0 {offsets = [5, 0], sizes = [1, 128], strides = [1, 1]} : vector<10x256xf32> to vector<1x128xf32>
    %89 = vector.broadcast %88 : vector<1x128xf32> to vector<8x128xf32>
    %90 = arith.addf %87, %89 : vector<8x128xf32>
    %cst_39 = arith.constant 5.000000e-01 : f32
    %91 = vector.broadcast %cst_39 : f32 to vector<8x128xf32>
    %92 = arith.mulf %91, %90 : vector<8x128xf32>
    %93 = math.tanh %92 : vector<8x128xf32>
    %cst_40 = arith.constant 5.000000e-01 : f32
    %94 = vector.broadcast %cst_40 : f32 to vector<8x128xf32>
    %95 = arith.mulf %94, %93 : vector<8x128xf32>
    %cst_41 = arith.constant 5.000000e-01 : f32
    %96 = vector.broadcast %cst_41 : f32 to vector<8x128xf32>
    %97 = arith.addf %95, %96 : vector<8x128xf32>
    %98 = arith.mulf %90, %97 : vector<8x128xf32>
    %c0_42 = arith.constant 0 : index
    %c0_43 = arith.constant 0 : index
    %99 = vector.load %arg9[%c0_42, %c0_43] : memref<128x128xbf16, #tpu.memory_space<vmem>>, vector<128x128xbf16>
    %100 = arith.truncf %98 : vector<8x128xf32> to vector<8x128xbf16>
    %cst_44 = arith.constant dense<0.000000e+00> : vector<8x128xf32>
    %101 = tpu.matmul %100, %99, %cst_44 {dimension_numbers = #tpu.dot_dimension_numbers<[1], [0], [0], [1], [0, 0, 1, 1], [], []>} : vector<8x128xbf16>, vector<128x128xbf16>, vector<8x128xf32> -> vector<8x128xf32>
    %102 = vector.extract_strided_slice %0 {offsets = [6, 0], sizes = [1, 128], strides = [1, 1]} : vector<10x256xf32> to vector<1x128xf32>
    %103 = vector.broadcast %102 : vector<1x128xf32> to vector<8x128xf32>
    %104 = arith.addf %101, %103 : vector<8x128xf32>
    %cst_45 = arith.constant 5.000000e-01 : f32
    %105 = vector.broadcast %cst_45 : f32 to vector<8x128xf32>
    %106 = arith.mulf %105, %104 : vector<8x128xf32>
    %107 = math.tanh %106 : vector<8x128xf32>
    %cst_46 = arith.constant 5.000000e-01 : f32
    %108 = vector.broadcast %cst_46 : f32 to vector<8x128xf32>
    %109 = arith.mulf %108, %107 : vector<8x128xf32>
    %cst_47 = arith.constant 5.000000e-01 : f32
    %110 = vector.broadcast %cst_47 : f32 to vector<8x128xf32>
    %111 = arith.addf %109, %110 : vector<8x128xf32>
    %112 = arith.mulf %104, %111 : vector<8x128xf32>
    %c0_48 = arith.constant 0 : index
    %c0_49 = arith.constant 0 : index
    %113 = vector.load %arg10[%c0_48, %c0_49] : memref<128x128xbf16, #tpu.memory_space<vmem>>, vector<128x128xbf16>
    %114 = arith.truncf %112 : vector<8x128xf32> to vector<8x128xbf16>
    %cst_50 = arith.constant dense<0.000000e+00> : vector<8x128xf32>
    %115 = tpu.matmul %114, %113, %cst_50 {dimension_numbers = #tpu.dot_dimension_numbers<[1], [0], [0], [1], [0, 0, 1, 1], [], []>} : vector<8x128xbf16>, vector<128x128xbf16>, vector<8x128xf32> -> vector<8x128xf32>
    %116 = vector.extract_strided_slice %0 {offsets = [7, 0], sizes = [1, 128], strides = [1, 1]} : vector<10x256xf32> to vector<1x128xf32>
    %117 = vector.broadcast %116 : vector<1x128xf32> to vector<8x128xf32>
    %118 = arith.addf %115, %117 : vector<8x128xf32>
    %cst_51 = arith.constant 5.000000e-01 : f32
    %119 = vector.broadcast %cst_51 : f32 to vector<8x128xf32>
    %120 = arith.mulf %119, %118 : vector<8x128xf32>
    %121 = math.tanh %120 : vector<8x128xf32>
    %cst_52 = arith.constant 5.000000e-01 : f32
    %122 = vector.broadcast %cst_52 : f32 to vector<8x128xf32>
    %123 = arith.mulf %122, %121 : vector<8x128xf32>
    %cst_53 = arith.constant 5.000000e-01 : f32
    %124 = vector.broadcast %cst_53 : f32 to vector<8x128xf32>
    %125 = arith.addf %123, %124 : vector<8x128xf32>
    %126 = arith.mulf %118, %125 : vector<8x128xf32>
    %c0_54 = arith.constant 0 : index
    %c0_55 = arith.constant 0 : index
    %127 = vector.load %arg11[%c0_54, %c0_55] : memref<128x128xbf16, #tpu.memory_space<vmem>>, vector<128x128xbf16>
    %128 = arith.truncf %126 : vector<8x128xf32> to vector<8x128xbf16>
    %cst_56 = arith.constant dense<0.000000e+00> : vector<8x128xf32>
    %129 = tpu.matmul %128, %127, %cst_56 {dimension_numbers = #tpu.dot_dimension_numbers<[1], [0], [0], [1], [0, 0, 1, 1], [], []>} : vector<8x128xbf16>, vector<128x128xbf16>, vector<8x128xf32> -> vector<8x128xf32>
    %130 = vector.extract_strided_slice %0 {offsets = [8, 0], sizes = [1, 128], strides = [1, 1]} : vector<10x256xf32> to vector<1x128xf32>
    %131 = vector.broadcast %130 : vector<1x128xf32> to vector<8x128xf32>
    %132 = arith.addf %129, %131 : vector<8x128xf32>
    %cst_57 = arith.constant 5.000000e-01 : f32
    %133 = vector.broadcast %cst_57 : f32 to vector<8x128xf32>
    %134 = arith.mulf %133, %132 : vector<8x128xf32>
    %135 = math.tanh %134 : vector<8x128xf32>
    %cst_58 = arith.constant 5.000000e-01 : f32
    %136 = vector.broadcast %cst_58 : f32 to vector<8x128xf32>
    %137 = arith.mulf %136, %135 : vector<8x128xf32>
    %cst_59 = arith.constant 5.000000e-01 : f32
    %138 = vector.broadcast %cst_59 : f32 to vector<8x128xf32>
    %139 = arith.addf %137, %138 : vector<8x128xf32>
    %140 = arith.mulf %132, %139 : vector<8x128xf32>
    %c0_60 = arith.constant 0 : index
    %c0_61 = arith.constant 0 : index
    %141 = vector.load %arg12[%c0_60, %c0_61] : memref<128x128xbf16, #tpu.memory_space<vmem>>, vector<128x128xbf16>
    %142 = arith.truncf %140 : vector<8x128xf32> to vector<8x128xbf16>
    %cst_62 = arith.constant dense<0.000000e+00> : vector<8x128xf32>
    %143 = tpu.matmul %142, %141, %cst_62 {dimension_numbers = #tpu.dot_dimension_numbers<[1], [0], [0], [1], [0, 0, 1, 1], [], []>} : vector<8x128xbf16>, vector<128x128xbf16>, vector<8x128xf32> -> vector<8x128xf32>
    %144 = vector.extract_strided_slice %0 {offsets = [9, 0], sizes = [1, 128], strides = [1, 1]} : vector<10x256xf32> to vector<1x128xf32>
    %145 = vector.broadcast %144 : vector<1x128xf32> to vector<8x128xf32>
    %146 = arith.addf %143, %145 : vector<8x128xf32>
    %cst_63 = arith.constant 5.000000e-01 : f32
    %147 = vector.broadcast %cst_63 : f32 to vector<8x128xf32>
    %148 = arith.mulf %147, %146 : vector<8x128xf32>
    %149 = math.tanh %148 : vector<8x128xf32>
    %cst_64 = arith.constant 5.000000e-01 : f32
    %150 = vector.broadcast %cst_64 : f32 to vector<8x128xf32>
    %151 = arith.mulf %150, %149 : vector<8x128xf32>
    %cst_65 = arith.constant 5.000000e-01 : f32
    %152 = vector.broadcast %cst_65 : f32 to vector<8x128xf32>
    %153 = arith.addf %151, %152 : vector<8x128xf32>
    %154 = arith.truncf %153 : vector<8x128xf32> to vector<8x128xbf16>
    %c0_66 = arith.constant 0 : index
    %c0_67 = arith.constant 0 : index
    %155 = vector.load %arg15[%c0_66, %c0_67] : memref<8x128xbf16, #tpu.memory_space<vmem>>, vector<8x128xbf16>
    tpu.vector_store %arg15[%c0_66, %c0_67], %154 {strides = array<i32>} : memref<8x128xbf16, #tpu.memory_space<vmem>>, vector<8x128xbf16>,
    %156 = arith.mulf %81, %81 : vector<8x128xf32>
    %157 = arith.mulf %63, %63 : vector<8x128xf32>
    %158 = arith.addf %156, %157 : vector<8x128xf32>
    %cst_68 = arith.constant 1.000000e+00 : f32
    %159 = vector.broadcast %cst_68 : f32 to vector<8x128xf32>
    %160 = arith.subf %158, %159 : vector<8x128xf32>
    %161 = math.log %81 : vector<8x128xf32>
    %cst_69 = arith.constant 2.000000e+00 : f32
    %162 = vector.broadcast %cst_69 : f32 to vector<8x128xf32>
    %163 = arith.mulf %162, %161 : vector<8x128xf32>
    %164 = arith.subf %160, %163 : vector<8x128xf32>
    %cst_70 = arith.constant dense<0.000000e+00> : vector<8xf32>
    %165 = vector.multi_reduction <add>, %164, %cst_70 [1] : vector<8x128xf32> to vector<8xf32>
    %166 = vector.shape_cast %165 : vector<8xf32> to vector<8x1xf32>
    %cst_71 = arith.constant 5.000000e-01 : f32
    %167 = vector.broadcast %cst_71 : f32 to vector<8x1xf32>
    %168 = arith.mulf %167, %166 : vector<8x1xf32>
    %c0_72 = arith.constant 0 : index
    %c0_73 = arith.constant 0 : index
    %169 = vector.load %arg14[%c0_72, %c0_73] : memref<8x512xf32, #tpu.memory_space<vmem>>, vector<8x128xf32>
    tpu.vector_store %arg14[%c0_72, %c0_73], %63 {strides = array<i32>} : memref<8x512xf32, #tpu.memory_space<vmem>>, vector<8x128xf32>,
    %c0_74 = arith.constant 0 : index
    %c128 = arith.constant 128 : index
    %170 = vector.load %arg14[%c0_74, %c128] : memref<8x512xf32, #tpu.memory_space<vmem>>, vector<8x128xf32>
    tpu.vector_store %arg14[%c0_74, %c128], %81 {strides = array<i32>} : memref<8x512xf32, #tpu.memory_space<vmem>>, vector<8x128xf32>,
    %c0_75 = arith.constant 0 : index
    %c256 = arith.constant 256 : index
    %171 = vector.load %arg14[%c0_75, %c256] : memref<8x512xf32, #tpu.memory_space<vmem>>, vector<8x128xf32>
    tpu.vector_store %arg14[%c0_75, %c256], %84 {strides = array<i32>} : memref<8x512xf32, #tpu.memory_space<vmem>>, vector<8x128xf32>,
    %172 = vector.shape_cast %168 : vector<8x1xf32> to vector<8x1xf32>
    %173 = vector.broadcast %172 : vector<8x1xf32> to vector<8x128xf32>
    %c0_76 = arith.constant 0 : index
    %c384 = arith.constant 384 : index
    %174 = vector.load %arg14[%c0_76, %c384] : memref<8x512xf32, #tpu.memory_space<vmem>>, vector<8x128xf32>
    tpu.vector_store %arg14[%c0_76, %c384], %173 {strides = array<i32>} : memref<8x512xf32, #tpu.memory_space<vmem>>, vector<8x128xf32>,
    return
  }
  func.func @transform_0(%arg0: i32) -> (i32, i32) {
    %c0_i32 = arith.constant 0 : i32
    %c0_i32_0 = arith.constant 0 : i32
    return %arg0, %c0_i32 : i32, i32
  }
  func.func @transform_1(%arg0: i32) -> (i32, i32) {
    %c0_i32 = arith.constant 0 : i32
    %c0_i32_0 = arith.constant 0 : i32
    return %arg0, %c0_i32 : i32, i32
  }
  func.func @transform_2(%arg0: i32) -> (i32, i32) {
    %c0_i32 = arith.constant 0 : i32
    %c0_i32_0 = arith.constant 0 : i32
    %c0_i32_1 = arith.constant 0 : i32
    return %c0_i32, %c0_i32_0 : i32, i32
  }
  func.func @transform_3(%arg0: i32) -> (i32, i32) {
    %c0_i32 = arith.constant 0 : i32
    %c0_i32_0 = arith.constant 0 : i32
    %c0_i32_1 = arith.constant 0 : i32
    return %c0_i32, %c0_i32_0 : i32, i32
  }
  func.func @transform_4(%arg0: i32) -> (i32, i32) {
    %c0_i32 = arith.constant 0 : i32
    %c0_i32_0 = arith.constant 0 : i32
    %c0_i32_1 = arith.constant 0 : i32
    return %c0_i32, %c0_i32_0 : i32, i32
  }
  func.func @transform_5(%arg0: i32) -> (i32, i32) {
    %c0_i32 = arith.constant 0 : i32
    %c0_i32_0 = arith.constant 0 : i32
    %c0_i32_1 = arith.constant 0 : i32
    return %c0_i32, %c0_i32_0 : i32, i32
  }
  func.func @transform_6(%arg0: i32) -> (i32, i32) {
    %c0_i32 = arith.constant 0 : i32
    %c0_i32_0 = arith.constant 0 : i32
    %c0_i32_1 = arith.constant 0 : i32
    return %c0_i32, %c0_i32_0 : i32, i32
  }
  func.func @transform_7(%arg0: i32) -> (i32, i32) {
    %c0_i32 = arith.constant 0 : i32
    %c0_i32_0 = arith.constant 0 : i32
    %c0_i32_1 = arith.constant 0 : i32
    return %c0_i32, %c0_i32_0 : i32, i32
  }
  func.func @transform_8(%arg0: i32) -> (i32, i32) {
    %c0_i32 = arith.constant 0 : i32
    %c0_i32_0 = arith.constant 0 : i32
    %c0_i32_1 = arith.constant 0 : i32
    return %c0_i32, %c0_i32_0 : i32, i32
  }
  func.func @transform_9(%arg0: i32) -> (i32, i32) {
    %c0_i32 = arith.constant 0 : i32
    %c0_i32_0 = arith.constant 0 : i32
    %c0_i32_1 = arith.constant 0 : i32
    return %c0_i32, %c0_i32_0 : i32, i32
  }
  func.func @transform_10(%arg0: i32) -> (i32, i32) {
    %c0_i32 = arith.constant 0 : i32
    %c0_i32_0 = arith.constant 0 : i32
    %c0_i32_1 = arith.constant 0 : i32
    return %c0_i32, %c0_i32_0 : i32, i32
  }
  func.func @transform_11(%arg0: i32) -> (i32, i32) {
    %c0_i32 = arith.constant 0 : i32
    %c0_i32_0 = arith.constant 0 : i32
    %c0_i32_1 = arith.constant 0 : i32
    return %c0_i32, %c0_i32_0 : i32, i32
  }
  func.func @transform_12(%arg0: i32) -> (i32, i32) {
    %c0_i32 = arith.constant 0 : i32
    %c0_i32_0 = arith.constant 0 : i32
    %c0_i32_1 = arith.constant 0 : i32
    return %c0_i32, %c0_i32_0 : i32, i32
  }
  func.func @transform_13(%arg0: i32) -> (i32, i32) {
    %c0_i32 = arith.constant 0 : i32
    %c0_i32_0 = arith.constant 0 : i32
    return %arg0, %c0_i32 : i32, i32
  }
  func.func @transform_14(%arg0: i32) -> (i32, i32) {
    %c0_i32 = arith.constant 0 : i32
    %c0_i32_0 = arith.constant 0 : i32
    return %arg0, %c0_i32 : i32, i32
  }
}

</mosaic_0001>

<bundles_post_ra>
// kernel: vae_forward.1
= control target key start
LH: loop header
LB: loop body
LE: loop exit
PB: predicated region body
PF: predicated region fallthrough
CT: control target
= control target key end

     0   :  { %20 = vsyncpa [#allocation3], 0  ;;  %s2050_s0 = inlined_call_operand.vmem [shape: bf16[8,128], index: 0, kind: input, shape index: {}]   ;;  %s2051_s1 = inlined_call_operand.vmem [shape: f32[8,128], index: 1, kind: input, shape index: {}]   ;;  %s2052_s2 = inlined_call_operand.hbm [shape: bf16[128,128], index: 2, kind: input, shape index: {}]   ;;  %s2053_s3 = inlined_call_operand.hbm [shape: bf16[128,128], index: 3, kind: input, shape index: {}]   ;;  %s2054_s4 = inlined_call_operand.hbm [shape: bf16[128,128], index: 4, kind: input, shape index: {}]   ;;  %s2055_s5 = inlined_call_operand.hbm [shape: bf16[128,128], index: 5, kind: input, shape index: {}]   ;;  %s2056_s6 = inlined_call_operand.hbm [shape: bf16[128,256], index: 6, kind: input, shape index: {}]   ;;  %s2057_s7 = inlined_call_operand.hbm [shape: bf16[128,128], index: 7, kind: input, shape index: {}]   ;;  %s2058_s8 = inlined_call_operand.hbm [shape: bf16[128,128], index: 8, kind: input, shape index: {}]   ;;  %s2059_s9 = inlined_call_operand.hbm [shape: bf16[128,128], index: 9, kind: input, shape index: {}]   ;;  %s2060_s10 = inlined_call_operand.hbm [shape: bf16[128,128], index: 10, kind: input, shape index: {}]   ;;  %s2061_s11 = inlined_call_operand.hbm [shape: bf16[128,128], index: 11, kind: input, shape index: {}]   ;;  %s2062_s12 = inlined_call_operand.vmem [shape: f32[10,256], index: 12, kind: input, shape index: {}]   ;;  %s2063_s13 = inlined_call_operand.vmem [shape: f32[8,512], index: 13, kind: output, shape index: {0}]   ;;  %s2064_s14 = inlined_call_operand.vmem [shape: bf16[8,128], index: 14, kind: output, shape index: {1}]  }
   0x1   :  { %21 = vsyncpa [#allocation5], 0 }
   0x2   :  { %22 = vsyncpa [#allocation8], 0 }
   0x3   :  { %23 = vsyncpa [#allocation11], 0 }
   0x4   :  { %24 = vsyncpa [#allocation14], 0 }
   0x5   :  { %25 = vsyncpa [#allocation17], 0  ;;  %s47_s15 = sshll.u32 %s2053_s3, 4  ;;  %s1864_s16 = smov [#allocation4]   ;;  %s48_s15 = int_to_ptr.hbm [resolvable:$true] %s47_s15 }
   0x6   :  { %s49_s17 = sshll.u32 %s1864_s16, 4  ;;  %s73_s20 = sshll.u32 %s2055_s5, 4  ;;  %s50_s17 = int_to_ptr.vmem [resolvable:$true] %s49_s17  ;;  %s74_s20 = int_to_ptr.hbm [resolvable:$true] %s73_s20 }
   0x7   :  { %s1865_s21 = smov 64   ;;  %s1866_s22 = smov 4  }
   0x8   :  { %55 = dma.hbm_to_vmem [thread:$0]  %s48_s15, 1024, %s50_s17, [#allocation5], %s1865_s21, %s1865_s21, %s1866_s22  }
   0x9   :  { %s1867_s23 = smov [#allocation7]   ;;  %s99_s3 = sshll.u32 %s2057_s7, 4  ;;  %s100_s3 = int_to_ptr.hbm [resolvable:$true] %s99_s3 }
   0xa   :  { %s75_s24 = sshll.u32 %s1867_s23, 4  ;;  %s125_s28 = sshll.u32 %s2059_s9, 4  ;;  %s76_s24 = int_to_ptr.vmem [resolvable:$true] %s75_s24  ;;  %s126_s28 = int_to_ptr.hbm [resolvable:$true] %s125_s28 }
   0xb   :  { %81 = dma.hbm_to_vmem [thread:$0]  %s74_s20, 1024, %s76_s24, [#allocation8], %s1865_s21, %s1865_s21, %s1866_s22  }
   0xc   :  { %s1868_s29 = smov [#allocation10]   ;;  %s1869_s15 = smov [#allocation13]  }
   0xd   :  { %s101_s30 = sshll.u32 %s1868_s29, 4  ;;  %s127_s7 = sshll.u32 %s1869_s15, 4  ;;  %s102_s30 = int_to_ptr.vmem [resolvable:$true] %s101_s30  ;;  %s128_s7 = int_to_ptr.vmem [resolvable:$true] %s127_s7 }
   0xe   :  { %107 = dma.hbm_to_vmem [thread:$0]  %s100_s3, 1024, %s102_s30, [#allocation11], %s1865_s21, %s1865_s21, %s1866_s22  }
   0xf   :  { %s34_s18 = sshll.u32 %s2052_s2, 4  ;;  %s60_s20 = sshll.u32 %s2054_s4, 4  ;;  %s35_s18 = int_to_ptr.hbm [resolvable:$true] %s34_s18  ;;  %s61_s20 = int_to_ptr.hbm [resolvable:$true] %s60_s20 }
  0x10   :  { %133 = dma.hbm_to_vmem [thread:$0]  %s126_s28, 1024, %s128_s7, [#allocation14], %s1865_s21, %s1865_s21, %s1866_s22  }
  0x11   :  { %s1870_s23 = smov [#allocation2]   ;;  %s1871_s25 = smov [#allocation6]  }
  0x12   :  { %s36_s24 = sshll.u32 %s1870_s23, 4  ;;  %s62_s2 = sshll.u32 %s1871_s25, 4  ;;  %s37_s24 = int_to_ptr.vmem [resolvable:$true] %s36_s24  ;;  %s63_s2 = int_to_ptr.vmem [resolvable:$true] %s62_s2 }
  0x13   :  { %42 = dma.hbm_to_vmem [thread:$0]  %s35_s18, 1024, %s37_s24, [#allocation3], %s1865_s21, %s1865_s21, %s1866_s22  }
  0x14   :  { %s86_s5 = sshll.u32 %s2056_s6, 4  ;;  %s1872_s4 = smov [#allocation9]   ;;  %s87_s5 = int_to_ptr.hbm [resolvable:$true] %s86_s5 }
  0x15   :  { %68 = dma.hbm_to_vmem [thread:$0]  %s61_s20, 1024, %s63_s2, [#allocation5], %s1865_s21, %s1865_s21, %s1866_s22  }
  0x16   :  { %s88_s27 = sshll.u32 %s1872_s4, 4  ;;  %s112_s30 = sshll.u32 %s2058_s8, 4  ;;  %s89_s27 = int_to_ptr.vmem [resolvable:$true] %s88_s27  ;;  %s113_s30 = int_to_ptr.hbm [resolvable:$true] %s112_s30 }
  0x17   :  { %s1873_s15 = smov 128   ;;  %s1874_s7 = smov 8  }
  0x18   :  { %94 = dma.hbm_to_vmem [thread:$0]  %s87_s5, 2048, %s89_s27, [#allocation8], %s1873_s15, %s1873_s15, %s1874_s7  }
  0x19   :  { %s1875_s16 = smov [#allocation12]   ;;  %s138_s9 = sshll.u32 %s2060_s10, 4  ;;  %s139_s9 = int_to_ptr.hbm [resolvable:$true] %s138_s9 }
  0x1a   :  { %s114_s17 = sshll.u32 %s1875_s16, 4  ;;  %s151_s8 = sshll.u32 %s2061_s11, 4  ;;  %s115_s17 = int_to_ptr.vmem [resolvable:$true] %s114_s17  ;;  %s152_s8 = int_to_ptr.hbm [resolvable:$true] %s151_s8 }
  0x1b   :  { %120 = dma.hbm_to_vmem [thread:$0]  %s113_s30, 1024, %s115_s17, [#allocation11], %s1865_s21, %s1865_s21, %s1866_s22  }
  0x1c   :  { %s1876_s23 = smov [#allocation15]   ;;  %s1877_s25 = smov [#allocation16]  }
  0x1d   :  { %s140_s24 = sshll.u32 %s1876_s23, 4  ;;  %s153_s10 = sshll.u32 %s1877_s25, 4  ;;  %s141_s24 = int_to_ptr.vmem [resolvable:$true] %s140_s24  ;;  %s154_s10 = int_to_ptr.vmem [resolvable:$true] %s153_s10 }
  0x1e   :  { %146 = dma.hbm_to_vmem [thread:$0]  %s139_s9, 1024, %s141_s24, [#allocation14], %s1865_s21, %s1865_s21, %s1866_s22  }
  0x1f   :  { %159 = dma.hbm_to_vmem [thread:$0]  %s152_s8, 1024, %s154_s10, [#allocation17], %s1865_s21, %s1865_s21, %s1866_s22  }
  0x20   :  { %1852 = dma.done.wait [#allocation3], 1024  }
  0x21   :  { %1853 = vsyncadd [#allocation3], 4294966272 }
  0x22   :  { %1854 = dma.done.wait [#allocation5], 2048  }
  0x23   :  { %1855 = vsyncadd [#allocation5], 4294965248 }
  0x24   :  { %1856 = dma.done.wait [#allocation8], 3072  }
  0x25   :  { %1857 = vsyncadd [#allocation8], 4294964224 }
  0x26   :  { %1858 = dma.done.wait [#allocation11], 2048  }
  0x27   :  { %1859 = vsyncadd [#allocation11], 4294965248 }
  0x28   :  { %1860 = dma.done.wait [#allocation14], 2048  }
  0x29   :  { %1861 = vsyncadd [#allocation14], 4294965248 }
  0x2a   :  { %1862 = dma.done.wait [#allocation17], 1024  }
  0x2b   :  { %1863 = vsyncadd [#allocation17], 4294966272  ;;  %v1493_v0 = vld [vmem:[#allocation2 + $0x38] sm:$0xff]  ;;  %v1492_v1 = vld [vmem:[#allocation2 + $0x30] sm:$0xff] }
  0x2c   :  { %271 = vmatpush.bf16.msra.mxu0 %v1493_v0  ;;  %v1501_v2 = vld [vmem:[#allocation4 + $0x38] sm:$0xff]  ;;  %v1500_v3 = vld [vmem:[#allocation4 + $0x30] sm:$0xff]  ;;  %v1491_v4 = vld [vmem:[#allocation2 + $0x28] sm:$0xff] }
  0x2d   :  { %355 = vmatpush.bf16.msra.mxu1 %v1501_v2  ;;  %v1499_v5 = vld [vmem:[#allocation4 + $0x28] sm:$0xff]  ;;  %v1490_v6 = vld [vmem:[#allocation2 + $0x20] sm:$0xff]  ;;  %v1489_v7 = vld [vmem:[#allocation2 + $0x18] sm:$0xff] }
  0x2e   :  { %v1488_v8 = vld [vmem:[#allocation2 + $0x10] sm:$0xff]  ;;  %v1487_v9 = vld [vmem:[#allocation2 + $0x8] sm:$0xff]  ;;  %v1486_v10 = vld [vmem:[#allocation2] sm:$0xff] }
  0x2f   :  { %v205_v11 = vld [vmem:[%s2050_s0] sm:$0xf]  ;;  %v1497_v13 = vld [vmem:[#allocation4 + $0x18] sm:$0xff]  ;;  %v1496_v14 = vld [vmem:[#allocation4 + $0x10] sm:$0xff] }
  0x30   :  { %272 = vmatpush.bf16.msra.mxu0 %v1492_v1  ;;  %v1498_v12 = vld [vmem:[#allocation4 + $0x20] sm:$0xff]  ;;  %v1495_v15 = vld [vmem:[#allocation4 + $0x8] sm:$0xff]  ;;  %v1509_v17 = vld [vmem:[#allocation6 + $0x38] sm:$0xff] }
  0x31   :  { %356 = vmatpush.bf16.msra.mxu1 %v1500_v3  ;;  %v1494_v16 = vld [vmem:[#allocation4] sm:$0xff]  ;;  %439 = vmatpush.bf16.msra.mxu2 %v1509_v17  ;;  %v1508_v18 = vld [vmem:[#allocation6 + $0x30] sm:$0xff]  ;;  %v1507_v20 = vld [vmem:[#allocation6 + $0x28] sm:$0xff] }
  0x32   :  { %v2016_v19 = vld [vmem:[%s2062_s12] sm:$0xff]  ;;  %v1505_v32 = vld [vmem:[#allocation6 + $0x18] sm:$0xff]  ;;  %v1504_v33 = vld [vmem:[#allocation6 + $0x10] sm:$0xff] }
  0x33   :  { %v222_v21 = vperm.slane %v2016_v19, 0  ;;  %v1506_v31 = vld [vmem:[#allocation6 + $0x20] sm:$0xff]  ;;  %v1503_v34 = vld [vmem:[#allocation6 + $0x8] sm:$0xff]  ;;  %v1517_v36 = vld [vmem:[#allocation7 + $0x38] sm:$0xff]  ;;  %v306_v39 = vperm.slane %v2016_v19, 1 }
  0x34   :  { %273 = vmatpush.bf16.msra.mxu0 %v1491_v4  ;;  %v1502_v35 = vld [vmem:[#allocation6] sm:$0xff]  ;;  %523 = vmatpush.bf16.msra.mxu3 %v1517_v36  ;;  %v1516_v37 = vld [vmem:[#allocation7 + $0x30] sm:$0xff]  ;;  %v1515_v38 = vld [vmem:[#allocation7 + $0x28] sm:$0xff] }
  0x35   :  { %357 = vmatpush.bf16.msra.mxu1 %v1499_v5  ;;  %440 = vmatpush.bf16.msra.mxu2 %v1508_v18  ;;  %v1514_v49 = vld [vmem:[#allocation7 + $0x20] sm:$0xff]  ;;  %v1513_v50 = vld [vmem:[#allocation7 + $0x18] sm:$0xff]  ;;  %v1512_v51 = vld [vmem:[#allocation7 + $0x10] sm:$0xff] }
  0x36   :  { %v1511_v52 = vld [vmem:[#allocation7 + $0x8] sm:$0xff]  ;;  %v1510_v53 = vld [vmem:[#allocation7] sm:$0xff]  ;;  %v1319_v54 = vld [vmem:[#allocation9 + $0x70] sm:$0xf] }
  0x37   :  { %v1533_v55 = vld [vmem:[#allocation9 + $0x74] sm:$0xf0]  ;;  %v1532_v56 = vld [vmem:[#allocation9 + $0x74] sm:$0xf]  ;;  %v1321_v58 = vld [vmem:[#allocation9 + $0x78] sm:$0xf0] }
  0x38   :  { %274 = vmatpush.bf16.msra.mxu0 %v1490_v6  ;;  %524 = vmatpush.bf16.msra.mxu3 %v1516_v37  ;;  %v1320_v57 = vor.u32 %v1533_v55, %v1319_v54  ;;  %v1311_v59 = vld [vmem:[#allocation9 + $0x60] sm:$0xf]  ;;  %v1531_v60 = vld [vmem:[#allocation9 + $0x64] sm:$0xf0]  ;;  %v1324_v61 = vor.u32 %v1532_v56, %v1321_v58  ;;  %v1530_v62 = vld [vmem:[#allocation9 + $0x64] sm:$0xf] }
  0x39   :  { %358 = vmatpush.bf16.msra.mxu1 %v1498_v12  ;;  %441 = vmatpush.bf16.msra.mxu2 %v1507_v20  ;;  %v1313_v63 = vld [vmem:[#allocation9 + $0x68] sm:$0xf0]  ;;  %v1312_v0 = vor.u32 %v1531_v60, %v1311_v59  ;;  %v1303_v2 = vld [vmem:[#allocation9 + $0x50] sm:$0xf]  ;;  %v1529_v3 = vld [vmem:[#allocation9 + $0x54] sm:$0xf0] }
  0x3a   :  { %v1316_v1 = vor.u32 %v1530_v62, %v1313_v63  ;;  %v1528_v4 = vld [vmem:[#allocation9 + $0x54] sm:$0xf]  ;;  %v1305_v5 = vld [vmem:[#allocation9 + $0x58] sm:$0xf0]  ;;  %v1304_v6 = vor.u32 %v1529_v3, %v1303_v2  ;;  %v1295_v18 = vld [vmem:[#allocation9 + $0x40] sm:$0xf] }
  0x3b   :  { %v1527_v20 = vld [vmem:[#allocation9 + $0x44] sm:$0xf0]  ;;  %v1271_v37 = vld [vmem:[#allocation9 + $0x10] sm:$0xf]  ;;  %v1541_v59 = vld [vmem:[#allocation10 + $0x38] sm:$0xff]  ;;  %v558_v2 = vperm.slane %v2016_v19, 4 }
  0x3c   :  { %275 = vmatpush.bf16.msra.mxu0 %v1489_v7  ;;  %525 = vmatpush.bf16.msra.mxu3 %v1515_v38  ;;  %v1308_v7 = vor.u32 %v1528_v4, %v1305_v5  ;;  %v1521_v38 = vld [vmem:[#allocation9 + $0x14] sm:$0xf0]  ;;  %v1540_v60 = vld [vmem:[#allocation10 + $0x30] sm:$0xff]  ;;  %v1538_v62 = vld [vmem:[#allocation10 + $0x20] sm:$0xff] }
  0x3d   :  { %359 = vmatpush.bf16.msra.mxu1 %v1497_v13  ;;  %442 = vmatpush.bf16.msra.mxu2 %v1506_v31  ;;  %v1279_v31 = vld [vmem:[#allocation9 + $0x20] sm:$0xf]  ;;  %v1537_v63 = vld [vmem:[#allocation10 + $0x18] sm:$0xff]  ;;  %v1535_v4 = vld [vmem:[#allocation10 + $0x8] sm:$0xff] }
  0x40   :  { %276 = vmatpush.bf16.msra.mxu0 %v1488_v8  ;;  %526 = vmatpush.bf16.msra.mxu3 %v1514_v49  ;;  %v390_v8 = vperm.slane %v2016_v19, 2  ;;  %v474_v49 = vperm.slane %v2016_v19, 3 }
  0x41   :  { %360 = vmatpush.bf16.msra.mxu1 %v1496_v14  ;;  %443 = vmatpush.bf16.msra.mxu2 %v1505_v32  ;;  %v1523_v32 = vld [vmem:[#allocation9 + $0x24] sm:$0xf0] }
  0x44   :  { %277 = vmatpush.bf16.msra.mxu0 %v1487_v9  ;;  %527 = vmatpush.bf16.msra.mxu3 %v1513_v50 }
  0x45   :  { %361 = vmatpush.bf16.msra.mxu1 %v1495_v15  ;;  %444 = vmatpush.bf16.msra.mxu2 %v1504_v33  ;;  %v1522_v33 = vld [vmem:[#allocation9 + $0x24] sm:$0xf] }
  0x48   :  { %278 = vmatpush.bf16.msra.mxu0 %v1486_v10  ;;  %528 = vmatpush.bf16.msra.mxu3 %v1512_v51 }
  0x49   :  { %362 = vmatpush.bf16.msra.mxu1 %v1494_v16  ;;  %445 = vmatpush.bf16.msra.mxu2 %v1503_v34  ;;  %v1280_v34 = vor.u32 %v1523_v32, %v1279_v31 }
  0x4b   :  { %279 = vmatmul.bf16.vlgmr.msra.gmra.mxu0 %v205_v11 }
  0x4c   :  { %529 = vmatpush.bf16.msra.mxu3 %v1511_v52  ;;  %640 = vmatpush.bf16.msrb.mxu0 %v1320_v57 }
  0x4d   :  { %446 = vmatpush.bf16.msra.mxu2 %v1502_v35  ;;  %653 = vmatpush.bf16.msrb.mxu1 %v1324_v61  ;;  %v1281_v35 = vld [vmem:[#allocation9 + $0x28] sm:$0xf0] }
  0x4e   :  { %v1284_v36 = vor.u32 %v1522_v33, %v1281_v35  ;;  %v1539_v61 = vld [vmem:[#allocation10 + $0x28] sm:$0xff] }
  0x50   :  { %530 = vmatpush.bf16.msra.mxu3 %v1510_v53  ;;  %641 = vmatpush.bf16.msrb.mxu0 %v1312_v0  ;;  %v1536_v0 = vld [vmem:[#allocation10 + $0x10] sm:$0xff] }
  0x51   :  { %654 = vmatpush.bf16.msrb.mxu1 %v1316_v1  ;;  %749 = vmatpush.bf16.msrb.mxu2 %v1541_v59  ;;  %v203_v1 = vld [vmem:[%s2062_s12 + $0x8] sm:$0xff] }
  0x52   :  { %v559_v3 = vperm.slane %v203_v1, 4  ;;  %v1550_v1 = vld [vmem:[#allocation13] sm:$0xff] }
  0x54   :  { %642 = vmatpush.bf16.msrb.mxu0 %v1304_v6 }
  0x55   :  { %655 = vmatpush.bf16.msrb.mxu1 %v1308_v7  ;;  %750 = vmatpush.bf16.msrb.mxu2 %v1540_v60  ;;  %v1534_v7 = vld [vmem:[#allocation10] sm:$0xff] }
  0x59   :  { %751 = vmatpush.bf16.msrb.mxu2 %v1539_v61  ;;  %v1554_v61 = vld [vmem:[#allocation13 + $0x20] sm:$0xff] }
  0x5d   :  { %752 = vmatpush.bf16.msrb.mxu2 %v1538_v62  ;;  %v1553_v62 = vld [vmem:[#allocation13 + $0x18] sm:$0xff] }
  0x61   :  { %753 = vmatpush.bf16.msrb.mxu2 %v1537_v63  ;;  %v1552_v63 = vld [vmem:[#allocation13 + $0x10] sm:$0xff] }
  0x65   :  { %754 = vmatpush.bf16.msrb.mxu2 %v1536_v0  ;;  %v1551_v0 = vld [vmem:[#allocation13 + $0x8] sm:$0xff] }
  0x69   :  { %755 = vmatpush.bf16.msrb.mxu2 %v1535_v4  ;;  %v1563_v4 = vld [vmem:[#allocation15 + $0x28] sm:$0xff] }
  0x6d   :  { %756 = vmatpush.bf16.msrb.mxu2 %v1534_v7 }
  0xc8   :  { %v280_v22 = vpop.f32.mrf.mxu0 }
  0xc9   :  { %v281_v23 = vadd.f32 %v280_v22, %v222_v21  ;;  %v1526_v21 = vld [vmem:[#allocation9 + $0x44] sm:$0xf]  ;;  %v1296_v22 = vor.u32 %v1527_v20, %v1295_v18  ;;  %v666_v18 = vlaneseq }
  0xcb   :  { %v284_v24 = vmul.f32 0.5, %v281_v23  ;;  %643 = vmatpush.bf16.msrb.mxu0 %v1296_v22 }
  0xcd   :  { %1588 = vtanh.f32 %v284_v24 }
  0xd0   :  { %v282_v25 = vpop.f32.mrf.mxu0 }
  0xd1   :  { %v1287_v25 = vld [vmem:[#allocation9 + $0x30] sm:$0xf] }
  0xd3   :  { %v1589_v26 = vpop.eup %1588 }
  0xd4   :  { %v286_v27 = vmul.f32 0.5, %v1589_v26  ;;  %v1525_v26 = vld [vmem:[#allocation9 + $0x34] sm:$0xf0] }
  0xd6   :  { %v287_v28 = vadd.f32 0.5, %v286_v27  ;;  %v1524_v27 = vld [vmem:[#allocation9 + $0x34] sm:$0xf] }
  0xd8   :  { %v288_v29 = vmul.f32 %v287_v28, %v281_v23  ;;  %v1297_v23 = vld [vmem:[#allocation9 + $0x48] sm:$0xf0]  ;;  %v1288_v28 = vor.u32 %v1525_v26, %v1287_v25  ;;  %v680_v26 = vld [vmem:[%s2051_s1] sm:$0xff] }
  0xd9   :  { %v1300_v24 = vor.u32 %v1526_v21, %v1297_v23  ;;  %v667_v21 = vand.u32 127, %v666_v18  ;;  %v1559_v18 = vld [vmem:[#allocation15 + $0x8] sm:$0xff] }
  0xda   :  { %v305_v30 = vpack.c.bf16 %v288_v29, %v288_v29  ;;  %v1289_v29 = vld [vmem:[#allocation9 + $0x38] sm:$0xf0]  ;;  %644 = vmatpush.bf16.msrb.mxu0 %v1288_v28 }
  0xdb   :  { %656 = vmatpush.bf16.msrb.mxu1 %v1300_v24  ;;  %vm668_vm0 = vcmp.lt.s32.totalorder %v667_v21, 4  ;;  %v1573_v21 = vld [vmem:[#allocation16 + $0x38] sm:$0xff] }
  0xdc   :  { %363 = vmatmul.bf16.vlgmr.msra.gmra.mxu1 %v305_v30  ;;  %v1292_v30 = vor.u32 %v1524_v27, %v1289_v29 }
  0xde   :  { %645 = vmatpush.bf16.msrb.mxu0 %v1280_v34 }
  0xdf   :  { %657 = vmatpush.bf16.msrb.mxu1 %v1292_v30 }
  0xe3   :  { %658 = vmatpush.bf16.msrb.mxu1 %v1284_v36 }
 0x159   :  { %v364_v40 = vpop.f32.mrf.mxu1 }
 0x15a   :  { %v365_v41 = vadd.f32 %v364_v40, %v306_v39  ;;  %v1520_v39 = vld [vmem:[#allocation9 + $0x14] sm:$0xf]  ;;  %v1272_v40 = vor.u32 %v1521_v38, %v1271_v37 }
 0x15c   :  { %v368_v42 = vmul.f32 0.5, %v365_v41  ;;  %646 = vmatpush.bf16.msrb.mxu0 %v1272_v40  ;;  %v1547_v40 = vld [vmem:[#allocation12 + $0x28] sm:$0xff] }
 0x15e   :  { %1590 = vtanh.f32 %v368_v42 }
 0x161   :  { %v366_v43 = vpop.f32.mrf.mxu1 }
 0x162   :  { %v1263_v43 = vld [vmem:[#allocation9] sm:$0xf] }
 0x164   :  { %v1591_v44 = vpop.eup %1590 }
 0x165   :  { %v370_v45 = vmul.f32 0.5, %v1591_v44  ;;  %v1519_v44 = vld [vmem:[#allocation9 + $0x4] sm:$0xf0] }
 0x167   :  { %v371_v46 = vadd.f32 0.5, %v370_v45  ;;  %v1518_v45 = vld [vmem:[#allocation9 + $0x4] sm:$0xf] }
 0x169   :  { %v372_v47 = vmul.f32 %v371_v46, %v365_v41  ;;  %v1273_v41 = vld [vmem:[#allocation9 + $0x18] sm:$0xf0]  ;;  %v1264_v46 = vor.u32 %v1519_v44, %v1263_v43  ;;  %v1544_v43 = vld [vmem:[#allocation12 + $0x10] sm:$0xff]  ;;  %v1543_v44 = vld [vmem:[#allocation12 + $0x8] sm:$0xff] }
 0x16a   :  { %v1276_v42 = vor.u32 %v1520_v39, %v1273_v41  ;;  %v1548_v39 = vld [vmem:[#allocation12 + $0x30] sm:$0xff]  ;;  %v1546_v41 = vld [vmem:[#allocation12 + $0x20] sm:$0xff] }
 0x16b   :  { %v389_v48 = vpack.c.bf16 %v372_v47, %v372_v47  ;;  %v1265_v47 = vld [vmem:[#allocation9 + $0x8] sm:$0xf0]  ;;  %647 = vmatpush.bf16.msrb.mxu0 %v1264_v46  ;;  %v1557_v46 = vld [vmem:[#allocation13 + $0x38] sm:$0xff] }
 0x16c   :  { %659 = vmatpush.bf16.msrb.mxu1 %v1276_v42  ;;  %v1545_v42 = vld [vmem:[#allocation12 + $0x18] sm:$0xff] }
 0x16d   :  { %447 = vmatmul.bf16.vlgmr.msra.gmra.mxu2 %v389_v48  ;;  %v1268_v48 = vor.u32 %v1518_v45, %v1265_v47  ;;  %v1542_v45 = vld [vmem:[#allocation12] sm:$0xff]  ;;  %v1556_v47 = vld [vmem:[#allocation13 + $0x30] sm:$0xff] }
 0x16e   :  { %1085 = vmatpush.bf16.msra.mxu2 %v1573_v21 }
 0x16f   :  { %917 = vmatpush.bf16.msra.mxu0 %v1557_v46 }
 0x170   :  { %660 = vmatpush.bf16.msrb.mxu1 %v1268_v48 }
 0x173   :  { %918 = vmatpush.bf16.msra.mxu0 %v1556_v47 }
 0x1f0   :  { %v448_v9 = vpop.f32.mrf.mxu2 }
 0x1f1   :  { %v449_v10 = vadd.f32 %v448_v9, %v390_v8 }
 0x1f3   :  { %v452_v11 = vmul.f32 0.5, %v449_v10 }
 0x1f5   :  { %1592 = vtanh.f32 %v452_v11 }
 0x1f8   :  { %v450_v12 = vpop.f32.mrf.mxu2 }
 0x1fb   :  { %v1593_v13 = vpop.eup %1592 }
 0x1fc   :  { %v454_v14 = vmul.f32 0.5, %v1593_v13 }
 0x1fe   :  { %v455_v15 = vadd.f32 0.5, %v454_v14 }
 0x200   :  { %v456_v16 = vmul.f32 %v455_v15, %v449_v10  ;;  %v1549_v15 = vld [vmem:[#allocation12 + $0x38] sm:$0xff] }
 0x201   :  { %833 = vmatpush.bf16.msrb.mxu3 %v1549_v15  ;;  %v1562_v15 = vld [vmem:[#allocation15 + $0x20] sm:$0xff] }
 0x202   :  { %v473_v17 = vpack.c.bf16 %v456_v16, %v456_v16 }
 0x204   :  { %531 = vmatmul.bf16.vlgmr.msra.gmra.mxu3 %v473_v17 }
 0x205   :  { %834 = vmatpush.bf16.msrb.mxu3 %v1548_v39 }
 0x209   :  { %835 = vmatpush.bf16.msrb.mxu3 %v1547_v40 }
 0x20d   :  { %836 = vmatpush.bf16.msrb.mxu3 %v1546_v41 }
 0x211   :  { %837 = vmatpush.bf16.msrb.mxu3 %v1545_v42 }
 0x215   :  { %838 = vmatpush.bf16.msrb.mxu3 %v1544_v43 }
 0x219   :  { %839 = vmatpush.bf16.msrb.mxu3 %v1543_v44 }
 0x21d   :  { %840 = vmatpush.bf16.msrb.mxu3 %v1542_v45 }
 0x287   :  { %v532_v50 = vpop.f32.mrf.mxu3 }
 0x288   :  { %v533_v51 = vadd.f32 %v532_v50, %v474_v49  ;;  %v1555_v50 = vld [vmem:[#allocation13 + $0x28] sm:$0xff] }
 0x289   :  { %919 = vmatpush.bf16.msra.mxu0 %v1555_v50 }
 0x28a   :  { %v536_v52 = vmul.f32 0.5, %v533_v51 }
 0x28c   :  { %1594 = vtanh.f32 %v536_v52 }
 0x28d   :  { %920 = vmatpush.bf16.msra.mxu0 %v1554_v61 }
 0x28f   :  { %v534_v53 = vpop.f32.mrf.mxu3 }
 0x291   :  { %921 = vmatpush.bf16.msra.mxu0 %v1553_v62 }
 0x292   :  { %v1595_v54 = vpop.eup %1594 }
 0x293   :  { %v538_v55 = vmul.f32 0.5, %v1595_v54 }
 0x295   :  { %v539_v56 = vadd.f32 0.5, %v538_v55  ;;  %922 = vmatpush.bf16.msra.mxu0 %v1552_v63 }
 0x297   :  { %v540_v57 = vmul.f32 %v539_v56, %v533_v51  ;;  %v700_v51 = vperm.slane %v2016_v19, 5 }
 0x299   :  { %v557_v58 = vpack.c.bf16 %v540_v57, %v540_v57  ;;  %923 = vmatpush.bf16.msra.mxu0 %v1551_v0 }
 0x29b   :  { %648 = vmatmul.bf16.vlgmr.msrb.gmra.mxu0 %v557_v58  ;;  %661 = vmatmul.bf16.vlgmr.msrb.gmra.mxu1 %v557_v58 }
 0x29d   :  { %924 = vmatpush.bf16.msra.mxu0 %v1550_v1 }
 0x318   :  { %v649_v5 = vpop.f32.mrf.mxu0  ;;  %v662_v6 = vpop.f32.mrf.mxu1 }
 0x319   :  { %v650_v8 = vadd.f32 %v649_v5, %v558_v2  ;;  %v663_v9 = vadd.f32 %v662_v6, %v559_v3  ;;  %v1565_v2 = vld [vmem:[#allocation15 + $0x38] sm:$0xff]  ;;  %v1564_v3 = vld [vmem:[#allocation15 + $0x30] sm:$0xff]  ;;  %v784_v5 = vperm.slane %v2016_v19, 6 }
 0x31a   :  { %1001 = vmatpush.bf16.msra.mxu1 %v1565_v2 }
 0x31b   :  { %1115 = vst [vmem:[%s2063_s13] sm:$0xff] %v650_v8  ;;  %v670_v10 = vand.u32 2147483647, %v663_v9  ;;  %v669_v22 = vmax.f32 %v663_v9, 0.0  ;;  %v1105_v31 = vmul.f32 %v650_v8, %v650_v8 }
 0x31d   :  { %v671_v11 = vsub.f32 0.0, %v670_v10 }
 0x31e   :  { %1002 = vmatpush.bf16.msra.mxu1 %v1564_v3 }
 0x31f   :  { %v672_v12 = vmul.f32 1.442695, %v671_v11 }
 0x320   :  { %v651_v13 = vpop.f32.mrf.mxu0  ;;  %v664_v14 = vpop.f32.mrf.mxu1 }
 0x321   :  { %1596 = vpow2.f32 %v672_v12 }
 0x322   :  { %1003 = vmatpush.bf16.msra.mxu1 %v1563_v4 }
 0x326   :  { %1004 = vmatpush.bf16.msra.mxu1 %v1562_v15 }
 0x327   :  { %v1597_v16 = vpop.eup %1596 }
 0x328   :  { %v674_v17 = vadd.f32 1.0, %v1597_v16  ;;  %v1561_v16 = vld [vmem:[#allocation15 + $0x18] sm:$0xff] }
 0x32a   :  { %1598 = vlog2.f32 %v674_v17  ;;  %1005 = vmatpush.bf16.msra.mxu1 %v1561_v16  ;;  %v1560_v17 = vld [vmem:[#allocation15 + $0x10] sm:$0xff] }
 0x32e   :  { %1006 = vmatpush.bf16.msra.mxu1 %v1560_v17 }
 0x330   :  { %v1599_v20 = vpop.eup %1598 }
 0x331   :  { %v676_v23 = vmul.f32 0.6931472, %v1599_v20  ;;  %v1558_v20 = vld [vmem:[#allocation15] sm:$0xff] }
 0x332   :  { %1007 = vmatpush.bf16.msra.mxu1 %v1559_v18 }
 0x333   :  { %v677_v24 = vadd.f32 %v676_v23, %v669_v22  ;;  %v1572_v22 = vld [vmem:[#allocation16 + $0x30] sm:$0xff]  ;;  %v1571_v23 = vld [vmem:[#allocation16 + $0x28] sm:$0xff] }
 0x334   :  { %1086 = vmatpush.bf16.msra.mxu2 %v1572_v22 }
 0x335   :  { %v678_v25 = vadd.f32 1e-08, %v677_v24  ;;  %v868_v24 = vperm.slane %v2016_v19, 7  ;;  %v1566_v19 = vld [vmem:[#allocation16] sm:$0xff] }
 0x336   :  { %1008 = vmatpush.bf16.msra.mxu1 %v1558_v20 }
 0x337   :  { %v679_v27 = vsel %vm668_vm0, %v678_v25, 1.0 }
 0x338   :  { %1116 = vst [vmem:[%s2063_s13 + $0x8] sm:$0xff] %v679_v27  ;;  %v681_v28 = vmul.f32 %v680_v26, %v679_v27  ;;  %1600 = vlog2.f32 %v679_v27  ;;  %v1104_v29 = vmul.f32 %v679_v27, %v679_v27  ;;  %1087 = vmatpush.bf16.msra.mxu2 %v1571_v23 }
 0x33a   :  { %v682_v30 = vadd.f32 %v681_v28, %v650_v8  ;;  %v1106_v33 = vadd.f32 %v1105_v31, %v1104_v29 }
 0x33c   :  { %v699_v32 = vpack.c.bf16 %v682_v30, %v682_v30  ;;  %1117 = vst [vmem:[%s2063_s13 + $0x10] sm:$0xff] %v682_v30  ;;  %v1485_v36 = vadd.f32 -1.0, %v1106_v33 }
 0x33e   :  { %v1601_v34 = vpop.eup %1600  ;;  %757 = vmatmul.bf16.vlgmr.msrb.gmra.mxu2 %v699_v32 }
 0x33f   :  { %v1109_v35 = vmul.f32 0.6931472, %v1601_v34  ;;  %v1570_v34 = vld [vmem:[#allocation16 + $0x20] sm:$0xff] }
 0x340   :  { %1088 = vmatpush.bf16.msra.mxu2 %v1570_v34 }
 0x341   :  { %v1110_v37 = vmul.f32 2.0, %v1109_v35  ;;  %v1569_v35 = vld [vmem:[#allocation16 + $0x18] sm:$0xff] }
 0x343   :  { %v1111_v38 = vsub.f32 %v1485_v36, %v1110_v37  ;;  %v1568_v36 = vld [vmem:[#allocation16 + $0x10] sm:$0xff]  ;;  %v1567_v37 = vld [vmem:[#allocation16 + $0x8] sm:$0xff] }
 0x344   :  { %1089 = vmatpush.bf16.msra.mxu2 %v1569_v35 }
 0x345   :  { %1112 = vadd.xlane.f32.xlu0 %v1111_v38  ;;  %v204_v38 = vld [vmem:[%s2062_s12 + $0x10] sm:$0x3] }
 0x346   :  { %v952_v39 = vperm.slane %v204_v38, 0 }
 0x348   :  { %1090 = vmatpush.bf16.msra.mxu2 %v1568_v36 }
 0x34c   :  { %1091 = vmatpush.bf16.msra.mxu2 %v1567_v37 }
 0x350   :  { %1092 = vmatpush.bf16.msra.mxu2 %v1566_v19 }
 0x3b8   :  { %v1113_v48 = vpop.xlane.xlu0 %1112 }
 0x3b9   :  { %v1114_v49 = vmul.f32 0.5, %v1113_v48 }
 0x3bb   :  { %1118 = vst [vmem:[%s2063_s13 + $0x18] sm:$0xff] %v1114_v49  ;;  %v1036_v49 = vperm.slane %v204_v38, 1 }
 0x3c1   :  { %v758_v52 = vpop.f32.mrf.mxu2 }
 0x3c2   :  { %v759_v53 = vadd.f32 %v758_v52, %v700_v51 }
 0x3c4   :  { %v762_v54 = vmul.f32 0.5, %v759_v53 }
 0x3c6   :  { %1602 = vtanh.f32 %v762_v54 }
 0x3c9   :  { %v760_v55 = vpop.f32.mrf.mxu2 }
 0x3cc   :  { %v1603_v56 = vpop.eup %1602 }
 0x3cd   :  { %v764_v57 = vmul.f32 0.5, %v1603_v56 }
 0x3cf   :  { %v765_v58 = vadd.f32 0.5, %v764_v57 }
 0x3d1   :  { %v766_v59 = vmul.f32 %v765_v58, %v759_v53 }
 0x3d3   :  { %v783_v60 = vpack.c.bf16 %v766_v59, %v766_v59 }
 0x3d5   :  { %841 = vmatmul.bf16.vlgmr.msrb.gmra.mxu3 %v783_v60 }
 0x458   :  { %v842_v6 = vpop.f32.mrf.mxu3 }
 0x459   :  { %v843_v7 = vadd.f32 %v842_v6, %v784_v5 }
 0x45b   :  { %v846_v8 = vmul.f32 0.5, %v843_v7 }
 0x45d   :  { %1604 = vtanh.f32 %v846_v8 }
 0x460   :  { %v844_v9 = vpop.f32.mrf.mxu3 }
 0x463   :  { %v1605_v10 = vpop.eup %1604 }
 0x464   :  { %v848_v11 = vmul.f32 0.5, %v1605_v10 }
 0x466   :  { %v849_v12 = vadd.f32 0.5, %v848_v11 }
 0x468   :  { %v850_v13 = vmul.f32 %v849_v12, %v843_v7 }
 0x46a   :  { %v867_v14 = vpack.c.bf16 %v850_v13, %v850_v13 }
 0x46c   :  { %925 = vmatmul.bf16.vlgmr.msra.gmra.mxu0 %v867_v14 }
 0x4e9   :  { %v926_v25 = vpop.f32.mrf.mxu0 }
 0x4ea   :  { %v927_v26 = vadd.f32 %v926_v25, %v868_v24 }
 0x4ec   :  { %v930_v27 = vmul.f32 0.5, %v927_v26 }
 0x4ee   :  { %1606 = vtanh.f32 %v930_v27 }
 0x4f1   :  { %v928_v28 = vpop.f32.mrf.mxu0 }
 0x4f4   :  { %v1607_v29 = vpop.eup %1606 }
 0x4f5   :  { %v932_v30 = vmul.f32 0.5, %v1607_v29 }
 0x4f7   :  { %v933_v31 = vadd.f32 0.5, %v932_v30 }
 0x4f9   :  { %v934_v32 = vmul.f32 %v933_v31, %v927_v26 }
 0x4fb   :  { %v951_v33 = vpack.c.bf16 %v934_v32, %v934_v32 }
 0x4fd   :  { %1009 = vmatmul.bf16.vlgmr.msra.gmra.mxu1 %v951_v33 }
 0x57a   :  { %v1010_v40 = vpop.f32.mrf.mxu1 }
 0x57b   :  { %v1011_v41 = vadd.f32 %v1010_v40, %v952_v39 }
 0x57d   :  { %v1014_v42 = vmul.f32 0.5, %v1011_v41 }
 0x57f   :  { %1608 = vtanh.f32 %v1014_v42 }
 0x582   :  { %v1012_v43 = vpop.f32.mrf.mxu1 }
 0x585   :  { %v1609_v44 = vpop.eup %1608 }
 0x586   :  { %v1016_v45 = vmul.f32 0.5, %v1609_v44 }
 0x588   :  { %v1017_v46 = vadd.f32 0.5, %v1016_v45 }
 0x58a   :  { %v1018_v47 = vmul.f32 %v1017_v46, %v1011_v41 }
 0x58c   :  { %v1035_v48 = vpack.c.bf16 %v1018_v47, %v1018_v47 }
 0x58e   :  { %1093 = vmatmul.bf16.vlgmr.msra.gmra.mxu2 %v1035_v48 }
 0x611   :  { %v1094_v50 = vpop.f32.mrf.mxu2 }
 0x612   :  { %v1095_v51 = vadd.f32 %v1094_v50, %v1036_v49 }
 0x614   :  { %v1098_v52 = vmul.f32 0.5, %v1095_v51 }
 0x616   :  { %1610 = vtanh.f32 %v1098_v52 }
 0x619   :  { %v1096_v53 = vpop.f32.mrf.mxu2 }
 0x61c   :  { %v1611_v54 = vpop.eup %1610 }
 0x61d   :  { %v1100_v55 = vmul.f32 0.5, %v1611_v54 }
 0x61f   :  { %v1101_v56 = vadd.f32 0.5, %v1100_v55 }
 0x621   :  { %v1102_v57 = vpack.c.bf16 %v1101_v56, %v1101_v56 }
 0x623   :  { %1103 = vst [vmem:[%s2064_s14] sm:$0xf] %v1102_v57 }
 0x624   :  { %1127 = vsyncpa [#allocation3], 1 }
 0x625   :  { %1128 = vsyncpa [#allocation5], 1 }
 0x626   :  { %1129 = vsyncpa [#allocation8], 1 }
 0x627   :  { %1130 = vsyncpa [#allocation11], 1 }
 0x628   :  { %1131 = vsyncpa [#allocation14], 1 }
 0x629   :  { %1132 = vsyncpa [#allocation17], 1 }

</bundles_post_ra>
